<compile_context>
chip_gen: v5e
topology: v5e:2x2
jax: 0.10.0
libtpu: 0.0.40
codegen_flags: <defaults>
</compile_context>

<pallas_src>
import jax
import jax.numpy as jnp
from jax.experimental import pallas as pl
from jax.experimental.pallas import tpu as pltpu


def _argtree_head_kernel(
    adu_ref,        # (B, Na, D)  graph-decoder ADU node reps            [VMEM]
    para_ref,       # (B, Np, D)  graph-decoder paragraph node reps      [VMEM]
    topic_ref,      # (B, D)      topic rep (already squeezed)           [VMEM]
    mask_ref,       # (B, Np)     float 0/1 paragraph mask               [VMEM]
    wp_ref,         # (H+5, C)    packed weights (see pack_params)       [VMEM]
    b_ref,          # (2,)        [direct_fc bias, fc bias]              [SMEM]
    out_ref,        # (B, P)      packed lane-dense output               [VMEM]
):
    f32 = jnp.float32
    adu = adu_ref[...].astype(f32)          # (B, Na, D)
    para = para_ref[...].astype(f32)        # (B, Np, D)
    topic = topic_ref[...].astype(f32)      # (B, D)
    mask = mask_ref[...].astype(f32)        # (B, Np)
    Wp = wp_ref[...].astype(f32)            # (H+5, C)

    D = adu.shape[-1]
    H = Wp.shape[0] - 5

    # Unpack the weight slab (static slices of a tiny in-register value).
    wtT = Wp[:H, :D]            # (H, D)  topic_fc weight, transposed
    wd = Wp[H:H + 1, :D]        # (1, D)  direct_fc weight (row layout)
    wa = Wp[H + 1:H + 2, :D]    # (1, D)  attention-pool weight (row layout)
    bt = Wp[H + 2:H + 3, :H]    # (1, H)  topic_fc bias
    w1 = Wp[H + 3:H + 4, :H]    # (1, H)  fc weight, pooled half
    w2 = Wp[H + 4:H + 5, :H]    # (1, H)  fc weight, topic half
    bd = b_ref[0]               # direct_fc bias   (SMEM scalar)
    bfc = b_ref[1]              # fc bias          (SMEM scalar)

    # ---- direct_fc (Linear(para_in, 1)) and attention scores ----
    # Output width is 1: VPU broadcast mul + XLU lane reduce (no MXU).
    wd3 = wd[None, :, :]                                      # (1, 1, D)
    wa3 = wa[None, :, :]                                      # (1, 1, D)
    adu_direct = jnp.sum(adu * wd3, axis=-1) + bd             # (B, Na)
    para_direct = jnp.sum(para * wd3, axis=-1) + bd           # (B, Np)
    scores = jnp.sum(para * wa3, axis=-1)                     # (B, Np)

    # ---- final_extractor(out, para_mask): masked max / mean / attention ----
    neg_big = jnp.float32(-1e30)
    m3 = mask[:, :, None]                                     # (B, Np, 1)

    # max pooling
    pool_max = jnp.max(jnp.where(m3 > 0, para, neg_big), axis=1)          # (B, D)

    # mean pooling
    denom = jnp.maximum(jnp.sum(mask, axis=1, keepdims=True), 1.0)        # (B, 1)
    pool_mean = jnp.sum(para * m3, axis=1) / denom                        # (B, D)

    # attention pooling
    scores = jnp.where(mask > 0, scores, neg_big)
    scores = scores - jnp.max(scores, axis=1, keepdims=True)
    expw = jnp.exp(scores) * mask
    attn = expw / jnp.maximum(jnp.sum(expw, axis=1, keepdims=True), 1e-20)
    pool_attn = jnp.sum(attn[:, :, None] * para, axis=1)                  # (B, D)

    # TODO(synk): final_extractor's exact combination of ['max','mean','attention']
    # is not defined in the provided code; we average the three pooled vectors so
    # the output dim matches nhid (as required by self.fc's input size).
    pooled = (pool_max + pool_mean + pool_attn) * jnp.float32(1.0 / 3.0)  # (B, H)

    # ---- topic_fc: Linear(para_in, nhid) + Tanh ----
    # At D=H=16 a MXU matmul is sub-1% utilized; VPU broadcast + lane reduce is
    # cheaper and keeps the whole kernel off the MXU result FIFO.
    topic_proj = jnp.tanh(
        jnp.sum(topic[:, None, :] * wtT[None, :, :], axis=-1) + bt)       # (B, H)

    # ---- fc: Linear(nhid + nhid, 1) without the lane concat ----
    pair = (jnp.sum(pooled * w1, axis=-1, keepdims=True)
            + jnp.sum(topic_proj * w2, axis=-1, keepdims=True) + bfc)     # (B, 1)

    # ---- pack all outputs into one lane-dense row per batch, store once ----
    B = adu_direct.shape[0]
    Na = adu_direct.shape[1]
    Np = para_direct.shape[1]
    P = out_ref.shape[-1]
    pieces = [adu_direct, para_direct, pair]
    pad = P - (Na + Np + 1)
    if pad > 0:
        pieces.append(jnp.zeros((B, pad), f32))
    out_ref[...] = jnp.concatenate(pieces, axis=-1).astype(out_ref.dtype)


def pack_params(params):
    """One-time layout plumbing: pack all small weights into a single VMEM slab
    and both scalar biases into one SMEM array (reduces input DMA count)."""
    wt = params["wt"]                       # (D, H)
    D, H = wt.shape
    C = max(D, H)

    def row(v, width):                      # (width,) -> (1, C)
        return jnp.pad(v.reshape(1, -1), ((0, 0), (0, C - width)))

    w_packed = jnp.concatenate(
        [
            jnp.pad(wt.T, ((0, 0), (0, C - D))),       # rows [0, H): wt^T
            row(params["wd"][:, 0], D),                 # row H:   direct_fc weight
            row(params["wa"][:, 0], D),                 # row H+1: attention weight
            row(params["bt"][0], H),                    # row H+2: topic_fc bias
            row(params["wfc"][:H, 0], H),               # row H+3: fc weight (pooled)
            row(params["wfc"][H:, 0], H),               # row H+4: fc weight (topic)
        ],
        axis=0,
    )                                                   # (H+5, C)
    b_packed = jnp.stack(
        [params["bd"].reshape(()), params["bfc"].reshape(())]).astype(jnp.float32)
    return {"w_packed": w_packed, "b_packed": b_packed, "D": D, "H": H}


def argtree_head(adu_reps, para_reps, topic_reps, para_mask, packed_params):
    """Fused Pallas head. Small shapes -> single full-VMEM-block kernel (no grid).

    TODO(synk): at production shapes (Na/Np in the hundreds, D >= 128) this
    should grow a grid over batch/span with BlockSpec tiles sized for v7x's
    64 MiB VMEM and dimension_semantics=("parallel", ...), and topic_fc should
    go back on the MXU.
    """
    B, Na, D = adu_reps.shape
    _, Np, _ = para_reps.shape

    packed_w = Na + Np + 1
    P = ((packed_w + 127) // 128) * 128       # lane-dense (multiple of 128) output

    vmem = pl.BlockSpec(memory_space=pltpu.MemorySpace.VMEM)
    smem = pl.BlockSpec(memory_space=pltpu.MemorySpace.SMEM)

    fn = pl.pallas_call(
        _argtree_head_kernel,
        out_shape=jax.ShapeDtypeStruct((B, P), jnp.float32),
        in_specs=[vmem, vmem, vmem, vmem, vmem, smem],
        out_specs=vmem,
    )
    packed = fn(
        adu_reps, para_reps, topic_reps, para_mask,
        packed_params["w_packed"], packed_params["b_packed"],
    )

    # Unpack (wrapper-side slicing / reshaping is free layout plumbing).
    adu_direct = packed[:, :Na, None]                  # (B, Na, 1)
    para_direct = packed[:, Na:Na + Np, None]          # (B, Np, 1)
    pair_score = packed[:, Na + Np:Na + Np + 1]        # (B, 1)
    # Match the PyTorch return order: (pair_score, adu_direct, para_direct)
    return pair_score, adu_direct, para_direct


def init_params(key, para_in, nhid):
    ks = jax.random.split(key, 5)
    scale = 0.1
    return {
        "wd":  scale * jax.random.normal(ks[0], (para_in, 1), jnp.float32),
        "bd":  jnp.zeros((1, 1), jnp.float32),
        "wt":  scale * jax.random.normal(ks[1], (para_in, nhid), jnp.float32),
        "bt":  jnp.zeros((1, nhid), jnp.float32),
        "wa":  scale * jax.random.normal(ks[2], (para_in, 1), jnp.float32),
        "wfc": scale * jax.random.normal(ks[3], (2 * nhid, 1), jnp.float32),
        "bfc": jnp.zeros((1, 1), jnp.float32),
    }


def reference(adu_reps, para_reps, topic_reps, para_mask, params):
    """Plain-JAX reference for correctness checking."""
    wd, bd = params["wd"], params["bd"][0, 0]
    adu_direct = adu_reps @ wd + bd
    para_direct = para_reps @ wd + bd
    m3 = para_mask[:, :, None]
    pool_max = jnp.max(jnp.where(m3 > 0, para_reps, -1e30), axis=1)
    pool_mean = jnp.sum(para_reps * m3, axis=1) / jnp.maximum(
        jnp.sum(para_mask, axis=1, keepdims=True), 1.0)
    scores = (para_reps @ params["wa"])[..., 0]
    scores = jnp.where(para_mask > 0, scores, -1e30)
    scores = scores - jnp.max(scores, axis=1, keepdims=True)
    expw = jnp.exp(scores) * para_mask
    attn = expw / jnp.maximum(jnp.sum(expw, axis=1, keepdims=True), 1e-20)
    pool_attn = jnp.einsum("bn,bnd->bd", attn, para_reps)
    pooled = (pool_max + pool_mean + pool_attn) / 3.0
    topic_proj = jnp.tanh(topic_reps @ params["wt"] + params["bt"])
    feat = jnp.concatenate([pooled, topic_proj], axis=-1)
    pair = feat @ params["wfc"] + params["bfc"][0, 0]
    return pair, adu_direct, para_direct


if __name__ == "__main__":
    # Small shapes implied by the module: hDim=16 -> nhid=16 (para_decoder=False),
    # graph_decoder.concat=False -> para_in = nhid = 16, final='single'.
    B, Na, Np = 2, 8, 8
    para_in = 16
    nhid = 16

    key = jax.random.PRNGKey(0)
    k_adu, k_para, k_topic, k_mask, k_params = jax.random.split(key, 5)

    adu_reps = jax.random.normal(k_adu, (B, Na, para_in), jnp.float32)
    para_reps = jax.random.normal(k_para, (B, Np, para_in), jnp.float32)
    topic_reps = jax.random.normal(k_topic, (B, para_in), jnp.float32)
    # paragraph mask: first few paragraphs valid per example
    lengths = jnp.array([6, 4], jnp.int32)
    para_mask = (jnp.arange(Np)[None, :] < lengths[:, None]).astype(jnp.float32)

    params = init_params(k_params, para_in, nhid)
    packed_params = pack_params(params)      # one-time layout plumbing

    pair_score, adu_direct, para_direct = argtree_head(
        adu_reps, para_reps, topic_reps, para_mask, packed_params)
    jax.block_until_ready((pair_score, adu_direct, para_direct))

    ref_pair, ref_adu, ref_para = reference(
        adu_reps, para_reps, topic_reps, para_mask, params)
    assert jnp.allclose(pair_score, ref_pair, atol=1e-4, rtol=1e-4)
    assert jnp.allclose(adu_direct, ref_adu, atol=1e-4, rtol=1e-4)
    assert jnp.allclose(para_direct, ref_para, atol=1e-4, rtol=1e-4)

    print("KERNEL_OK")
</pallas_src>

<mosaic_0001>
module attributes {stable_mosaic.version = 11 : i64} {
  func.func @_argtree_head_kernel(%arg0: memref<2x8x16xf32, #tpu.memory_space<vmem>>, %arg1: memref<2x8x16xf32, #tpu.memory_space<vmem>>, %arg2: memref<2x16xf32, #tpu.memory_space<vmem>>, %arg3: memref<2x8xf32, #tpu.memory_space<vmem>>, %arg4: memref<21x16xf32, #tpu.memory_space<vmem>>, %arg5: memref<2xf32, #tpu.memory_space<smem>>, %arg6: memref<2x128xf32, #tpu.memory_space<vmem>>) attributes {dimension_semantics = [], scalar_prefetch = 0 : i64, scratch_operands = 0 : i64, tpu.core_type = #tpu.core_type<tc>} {
    %c0 = arith.constant 0 : index
    %c0_0 = arith.constant 0 : index
    %c0_1 = arith.constant 0 : index
    %0 = vector.load %arg0[%c0, %c0_0, %c0_1] : memref<2x8x16xf32, #tpu.memory_space<vmem>>, vector<2x8x16xf32>
    %c0_2 = arith.constant 0 : index
    %c0_3 = arith.constant 0 : index
    %c0_4 = arith.constant 0 : index
    %1 = vector.load %arg1[%c0_2, %c0_3, %c0_4] : memref<2x8x16xf32, #tpu.memory_space<vmem>>, vector<2x8x16xf32>
    %c0_5 = arith.constant 0 : index
    %c0_6 = arith.constant 0 : index
    %2 = vector.load %arg2[%c0_5, %c0_6] : memref<2x16xf32, #tpu.memory_space<vmem>>, vector<2x16xf32>
    %c0_7 = arith.constant 0 : index
    %c0_8 = arith.constant 0 : index
    %3 = vector.load %arg3[%c0_7, %c0_8] : memref<2x8xf32, #tpu.memory_space<vmem>>, vector<2x8xf32>
    %c0_9 = arith.constant 0 : index
    %c0_10 = arith.constant 0 : index
    %4 = vector.load %arg4[%c0_9, %c0_10] : memref<21x16xf32, #tpu.memory_space<vmem>>, vector<21x16xf32>
    %5 = vector.extract_strided_slice %4 {offsets = [0, 0], sizes = [16, 16], strides = [1, 1]} : vector<21x16xf32> to vector<16x16xf32>
    %6 = vector.extract_strided_slice %4 {offsets = [16, 0], sizes = [1, 16], strides = [1, 1]} : vector<21x16xf32> to vector<1x16xf32>
    %7 = vector.extract_strided_slice %4 {offsets = [17, 0], sizes = [1, 16], strides = [1, 1]} : vector<21x16xf32> to vector<1x16xf32>
    %8 = vector.extract_strided_slice %4 {offsets = [18, 0], sizes = [1, 16], strides = [1, 1]} : vector<21x16xf32> to vector<1x16xf32>
    %9 = vector.extract_strided_slice %4 {offsets = [19, 0], sizes = [1, 16], strides = [1, 1]} : vector<21x16xf32> to vector<1x16xf32>
    %10 = vector.extract_strided_slice %4 {offsets = [20, 0], sizes = [1, 16], strides = [1, 1]} : vector<21x16xf32> to vector<1x16xf32>
    %c0_11 = arith.constant 0 : index
    %11 = memref.load %arg5[%c0_11] : memref<2xf32, #tpu.memory_space<smem>>
    %c1 = arith.constant 1 : index
    %12 = memref.load %arg5[%c1] : memref<2xf32, #tpu.memory_space<smem>>
    %13 = vector.shape_cast %6 : vector<1x16xf32> to vector<1x1x16xf32>
    %14 = vector.shape_cast %7 : vector<1x16xf32> to vector<1x1x16xf32>
    %15 = vector.broadcast %13 : vector<1x1x16xf32> to vector<2x8x16xf32>
    %16 = arith.mulf %0, %15 : vector<2x8x16xf32>
    %cst = arith.constant dense<0.000000e+00> : vector<2x8xf32>
    %17 = vector.multi_reduction <add>, %16, %cst [2] : vector<2x8x16xf32> to vector<2x8xf32>
    %18 = vector.broadcast %11 : f32 to vector<2x8xf32>
    %19 = arith.addf %17, %18 : vector<2x8xf32>
    %20 = vector.broadcast %13 : vector<1x1x16xf32> to vector<2x8x16xf32>
    %21 = arith.mulf %1, %20 : vector<2x8x16xf32>
    %cst_12 = arith.constant dense<0.000000e+00> : vector<2x8xf32>
    %22 = vector.multi_reduction <add>, %21, %cst_12 [2] : vector<2x8x16xf32> to vector<2x8xf32>
    %23 = vector.broadcast %11 : f32 to vector<2x8xf32>
    %24 = arith.addf %22, %23 : vector<2x8xf32>
    %25 = vector.broadcast %14 : vector<1x1x16xf32> to vector<2x8x16xf32>
    %26 = arith.mulf %1, %25 : vector<2x8x16xf32>
    %cst_13 = arith.constant dense<0.000000e+00> : vector<2x8xf32>
    %27 = vector.multi_reduction <add>, %26, %cst_13 [2] : vector<2x8x16xf32> to vector<2x8xf32>
    %28 = vector.shape_cast %3 : vector<2x8xf32> to vector<2x8x1xf32>
    %cst_14 = arith.constant 0.000000e+00 : f32
    %29 = vector.broadcast %cst_14 : f32 to vector<2x8x1xf32>
    %30 = arith.cmpf ogt, %28, %29 : vector<2x8x1xf32>
    %cst_15 = arith.constant -1.000000e+30 : f32
    %31 = vector.shape_cast %30 : vector<2x8x1xi1> to vector<2x8x1xi1>
    %32 = vector.broadcast %31 : vector<2x8x1xi1> to vector<2x8x16xi1>
    %33 = vector.broadcast %cst_15 : f32 to vector<2x8x16xf32>
    %34 = arith.select %32, %1, %33 : vector<2x8x16xi1>, vector<2x8x16xf32>
    %cst_16 = arith.constant dense<0xFF800000> : vector<2x16xf32>
    %35 = vector.multi_reduction <maximumf>, %34, %cst_16 [1] : vector<2x8x16xf32> to vector<2x16xf32>
    %cst_17 = arith.constant dense<0.000000e+00> : vector<2xf32>
    %36 = vector.multi_reduction <add>, %3, %cst_17 [1] : vector<2x8xf32> to vector<2xf32>
    %37 = vector.shape_cast %36 : vector<2xf32> to vector<2x1xf32>
    %cst_18 = arith.constant 1.000000e+00 : f32
    %38 = vector.broadcast %cst_18 : f32 to vector<2x1xf32>
    %39 = arith.maximumf %37, %38 : vector<2x1xf32>
    %40 = vector.broadcast %28 : vector<2x8x1xf32> to vector<2x8x16xf32>
    %41 = arith.mulf %1, %40 : vector<2x8x16xf32>
    %cst_19 = arith.constant dense<0.000000e+00> : vector<2x16xf32>
    %42 = vector.multi_reduction <add>, %41, %cst_19 [1] : vector<2x8x16xf32> to vector<2x16xf32>
    %43 = vector.broadcast %39 : vector<2x1xf32> to vector<2x16xf32>
    %44 = arith.divf %42, %43 : vector<2x16xf32>
    %cst_20 = arith.constant 0.000000e+00 : f32
    %45 = vector.broadcast %cst_20 : f32 to vector<2x8xf32>
    %46 = arith.cmpf ogt, %3, %45 : vector<2x8xf32>
    %cst_21 = arith.constant -1.000000e+30 : f32
    %47 = vector.broadcast %cst_21 : f32 to vector<2x8xf32>
    %48 = arith.select %46, %27, %47 : vector<2x8xi1>, vector<2x8xf32>
    %cst_22 = arith.constant dense<0xFF800000> : vector<2xf32>
    %49 = vector.multi_reduction <maximumf>, %48, %cst_22 [1] : vector<2x8xf32> to vector<2xf32>
    %50 = vector.shape_cast %49 : vector<2xf32> to vector<2x1xf32>
    %51 = vector.broadcast %50 : vector<2x1xf32> to vector<2x8xf32>
    %52 = arith.subf %48, %51 : vector<2x8xf32>
    %53 = math.exp %52 : vector<2x8xf32>
    %54 = arith.mulf %53, %3 : vector<2x8xf32>
    %cst_23 = arith.constant dense<0.000000e+00> : vector<2xf32>
    %55 = vector.multi_reduction <add>, %54, %cst_23 [1] : vector<2x8xf32> to vector<2xf32>
    %56 = vector.shape_cast %55 : vector<2xf32> to vector<2x1xf32>
    %cst_24 = arith.constant 9.99999968E-21 : f32
    %57 = vector.broadcast %cst_24 : f32 to vector<2x1xf32>
    %58 = arith.maximumf %56, %57 : vector<2x1xf32>
    %59 = vector.broadcast %58 : vector<2x1xf32> to vector<2x8xf32>
    %60 = arith.divf %54, %59 : vector<2x8xf32>
    %61 = vector.shape_cast %60 : vector<2x8xf32> to vector<2x8x1xf32>
    %62 = vector.broadcast %61 : vector<2x8x1xf32> to vector<2x8x16xf32>
    %63 = arith.mulf %62, %1 : vector<2x8x16xf32>
    %cst_25 = arith.constant dense<0.000000e+00> : vector<2x16xf32>
    %64 = vector.multi_reduction <add>, %63, %cst_25 [1] : vector<2x8x16xf32> to vector<2x16xf32>
    %65 = arith.addf %35, %44 : vector<2x16xf32>
    %66 = arith.addf %65, %64 : vector<2x16xf32>
    %cst_26 = arith.constant 0.333333343 : f32
    %67 = vector.broadcast %cst_26 : f32 to vector<2x16xf32>
    %68 = arith.mulf %66, %67 : vector<2x16xf32>
    %69 = vector.shape_cast %2 : vector<2x16xf32> to vector<2x1x16xf32>
    %70 = vector.shape_cast %5 : vector<16x16xf32> to vector<1x16x16xf32>
    %71 = vector.broadcast %69 : vector<2x1x16xf32> to vector<2x16x16xf32>
    %72 = vector.broadcast %70 : vector<1x16x16xf32> to vector<2x16x16xf32>
    %73 = arith.mulf %71, %72 : vector<2x16x16xf32>
    %cst_27 = arith.constant dense<0.000000e+00> : vector<2x16xf32>
    %74 = vector.multi_reduction <add>, %73, %cst_27 [2] : vector<2x16x16xf32> to vector<2x16xf32>
    %75 = vector.broadcast %8 : vector<1x16xf32> to vector<2x16xf32>
    %76 = arith.addf %74, %75 : vector<2x16xf32>
    %77 = math.tanh %76 : vector<2x16xf32>
    %78 = vector.broadcast %9 : vector<1x16xf32> to vector<2x16xf32>
    %79 = arith.mulf %68, %78 : vector<2x16xf32>
    %cst_28 = arith.constant dense<0.000000e+00> : vector<2xf32>
    %80 = vector.multi_reduction <add>, %79, %cst_28 [1] : vector<2x16xf32> to vector<2xf32>
    %81 = vector.shape_cast %80 : vector<2xf32> to vector<2x1xf32>
    %82 = vector.broadcast %10 : vector<1x16xf32> to vector<2x16xf32>
    %83 = arith.mulf %77, %82 : vector<2x16xf32>
    %cst_29 = arith.constant dense<0.000000e+00> : vector<2xf32>
    %84 = vector.multi_reduction <add>, %83, %cst_29 [1] : vector<2x16xf32> to vector<2xf32>
    %85 = vector.shape_cast %84 : vector<2xf32> to vector<2x1xf32>
    %86 = arith.addf %81, %85 : vector<2x1xf32>
    %87 = vector.broadcast %12 : f32 to vector<2x1xf32>
    %88 = arith.addf %86, %87 : vector<2x1xf32>
    %cst_30 = arith.constant 0.000000e+00 : f32
    %89 = vector.broadcast %cst_30 : f32 to vector<2x111xf32>
    %90 = tpu.concatenate %19, %24, %88, %89 in 1 : vector<2x8xf32>, vector<2x8xf32>, vector<2x1xf32>, vector<2x111xf32> -> vector<2x128xf32>
    %c0_31 = arith.constant 0 : index
    %c0_32 = arith.constant 0 : index
    %91 = vector.load %arg6[%c0_31, %c0_32] : memref<2x128xf32, #tpu.memory_space<vmem>>, vector<2x128xf32>
    tpu.vector_store %arg6[%c0_31, %c0_32], %90 {strides = array<i32>} : memref<2x128xf32, #tpu.memory_space<vmem>>, vector<2x128xf32>,
    return
  }
}

</mosaic_0001>

<bundles_post_ra>
// kernel: tpu_custom_call.1
= control target key start
LH: loop header
LB: loop body
LE: loop exit
PB: predicated region body
PF: predicated region fallthrough
CT: control target
= control target key end

     0   :  { %11 = vsyncpa [#allocation4], 0  ;;  %s634_s0 = inlined_call_operand.vmem [shape: f32[2,8,16], index: 0, kind: input, shape index: {}]   ;;  %s635_s1 = inlined_call_operand.vmem [shape: f32[2,8,16], index: 1, kind: input, shape index: {}]   ;;  %s636_s2 = inlined_call_operand.vmem [shape: f32[2,16], index: 2, kind: input, shape index: {}]   ;;  %s637_s3 = inlined_call_operand.vmem [shape: f32[2,8], index: 3, kind: input, shape index: {}]   ;;  %s638_s4 = inlined_call_operand.vmem [shape: f32[21,16], index: 4, kind: input, shape index: {}]   ;;  %s639_s5 = inlined_call_operand.vmem [shape: f32[2], index: 5, kind: input, shape index: {}]   ;;  %s640_s6 = inlined_call_operand.hbm [shape: f32[2,128], index: 6, kind: output, shape index: {}]  }
   0x1   :  { %12 = vsyncpa [#allocation3], 0  ;;  %s28_s23 = sshll.u32 %s639_s5, 4  ;;  %s458_s24 = smov [#allocation2]   ;;  %s29_s23 = int_to_ptr.vmem [resolvable:$true] %s28_s23 }
   0x2   :  { %31 = dma.vmem_to_smem %s29_s23, 16, %s458_s24, [#allocation4]  }
   0x3   :  { %454 = dma.done.wait [#allocation4], 16  }
   0x4   :  { %455 = vsyncadd [#allocation4], 4294967280 }
   0x5   :  { %36 = sfence }
   0x6   :  { %v502_v0 = vld [vmem:[%s635_s1] sm:$0xff]  ;;  %v507_v1 = vld [vmem:[%s638_s4 + $0x10] sm:$0x1f]  ;;  %v81_v2 = vlaneseq  ;;  %v38_v5 = vld [vmem:[%s634_s0 + $0x8] sm:$0xff]  ;;  %vm51_vm0 = vcmask 130048   ;;  %vm116_vm1 = vcmask 58368  }
   0x7   :  { %v71_v3 = vperm.slane %v507_v1, 1  ;;  %v48_v4 = vperm.slane %v507_v1, 0  ;;  %v520_v9 = vld [vmem:[%s635_s1 + $0x8] sm:$0xff]  ;;  %v37_v15 = vld [vmem:[%s634_s0] sm:$0xff]  ;;  %v266_v36 = vperm.slane %v507_v1, 2  ;;  %v302_v43 = vperm.slane %v507_v1, 4 }
   0x8   :  { %v514_v6 = vshrl.u32 %v81_v2, 7  ;;  %v41_v16 = vld [vmem:[%s636_s2] sm:$0x3]  ;;  %v44_v32 = vld [vmem:[%s638_s4 + $0x8] sm:$0xff]  ;;  %v564_v42 = vand.u32 127, %v81_v2  ;;  %vm178_vm2 = vcmask 1041409  }
   0x9   :  { %v72_v7 = vmul.f32 %v71_v3, %v502_v0  ;;  %v50_v8 = vmul.f32 %v48_v4, %v38_v5  ;;  %v73_v13 = vmul.f32 %v71_v3, %v520_v9  ;;  %v61_v14 = vmul.f32 %v48_v4, %v502_v0  ;;  %v43_v21 = vld [vmem:[%s638_s4] sm:$0xff]  ;;  %s389_s4 = sld [smem:[#allocation2 + $0x1]]  ;;  %s460_s15 = smov [#allocation5]  }
   0xa   :  { %v523_v10 = vadd.s32 8, %v514_v6  ;;  %393 = vset.pattern.permute.xlu2 %v514_v6  ;;  %394 = vset.pattern.permute.xlu1 %v514_v6  ;;  %v49_v19 = vmul.f32 %v48_v4, %v37_v15  ;;  %v245_v20 = vrot.slane %v41_v16, 1  ;;  %v62_v24 = vmul.f32 %v48_v4, %v520_v9  ;;  %v548_v26 = vld [vmem:[%s637_s3] sm:$0x3]  ;;  %s46_s3 = sld [smem:[#allocation2]]  ;;  %s377_s16 = sshll.u32 %s460_s15, 4  ;;  %s378_s16 = int_to_ptr.vmem [resolvable:$true] %s377_s16 }
   0xb   :  { %v74_v11 = vsel %vm51_vm0, %v72_v7, 0.0  ;;  %v55_v12 = vsel %vm51_vm0, %v50_v8, 0.0  ;;  %v77_v17 = vsel %vm51_vm0, %v73_v13, 0.0  ;;  %v63_v18 = vsel %vm51_vm0, %v61_v14, 0.0  ;;  %s379_s19 = sshll.u32 %s640_s6, 4  ;;  %s380_s19 = int_to_ptr.hbm [resolvable:$true] %s379_s19 }
   0xc   :  { %75 = vadd.xlane.f32.xlu0 %v74_v11  ;;  %56 = vadd.xlane.f32.xlu2 %v55_v12  ;;  %v52_v22 = vsel %vm51_vm0, %v49_v19, 0.0  ;;  %v247_v23 = vperm.slane %v245_v20, 0  ;;  %v66_v27 = vsel %vm51_vm0, %v62_v24, 0.0  ;;  %v117_v29 = vsel %vm116_vm1, %v548_v26, 0.0 }
   0xd   :  { %395 = vset.pattern.permute.xlu0 %v523_v10  ;;  %53 = vadd.xlane.f32.xlu1 %v52_v22  ;;  %v246_v30 = vperm.slane %v41_v16, 0  ;;  %v80_v37 = vperm.slane %v548_v26, 0  ;;  %v87_v38 = vperm.slane %v548_v26, 1  ;;  %vm171_vm3 = vcmp.gt.f32.partialorder %v548_v26, 0.0 }
   0xe   :  { %v252_v25 = vmul.f32 %v247_v23, %v43_v21  ;;  %v253_v39 = vmul.f32 %v247_v23, %v44_v32  ;;  %v575_v57 = vadd.s32 4294967288, %v564_v42  ;;  %vm366_vm4 = vcmask 64512  }
   0xf   :  { %v250_v31 = vmul.f32 %v246_v30, %v43_v21  ;;  %v251_v34 = vmul.f32 %v246_v30, %v44_v32 }
  0x10   :  { %v260_v28 = vsel %vm51_vm0, %v252_v25, 0.0  ;;  %v263_v40 = vsel %vm51_vm0, %v253_v39, 0.0  ;;  %v58_v44 = vstv %s46_s3 }
  0x11   :  { %v254_v33 = vsel %vm51_vm0, %v250_v31, 0.0  ;;  %v257_v35 = vsel %vm51_vm0, %v251_v34, 0.0 }
  0x14   :  { %78 = vadd.xlane.f32.xlu0 %v77_v17  ;;  %64 = vadd.xlane.f32.xlu2 %v63_v18  ;;  %v459_v18 = vmov 0  }
  0x15   :  { %118 = vadd.xlane.f32.xlu1 %v117_v29 }
  0x1c   :  { %67 = vadd.xlane.f32.xlu0 %v66_v27  ;;  %261 = vadd.xlane.f32.xlu2 %v260_v28 }
  0x1d   :  { %255 = vadd.xlane.f32.xlu1 %v254_v33 }
  0x25   :  { %258 = vadd.xlane.f32.xlu1 %v257_v35 }
  0x2d   :  { %264 = vadd.xlane.f32.xlu1 %v263_v40 }
  0x30   :  { %278 = vperm.xlu0 %395, %v266_v36  }
  0x34   :  { %85 = vperm.xlu2 %393, %v80_v37  }
  0x38   :  { %396 = vset.pattern.permute.xlu0 %v514_v6 }
  0x40   :  { %92 = vperm.xlu0 %396, %v87_v38  }
  0x48   :  { %308 = vperm.xlu0 %396, %v302_v43  }
  0x50   :  { %399 = vset.pattern.permute.xlu0 %v459_v18 }
  0x7f   :  { %v76_v41 = vpop.xlane.xlu0 %75  ;;  %v57_v45 = vpop.xlane.xlu2 %56 }
  0x80   :  { %v60_v47 = vadd.f32 %v58_v44, %v57_v45  ;;  %v176_v48 = vperm.slane %v76_v41, %v564_v42  ;;  %v54_v50 = vpop.xlane.xlu1 %53 }
  0x81   :  { %v59_v52 = vadd.f32 %v58_v44, %v54_v50 }
  0x82   :  { %v357_v51 = vperm.slane %v60_v47, %v564_v42 }
  0x83   :  { %v356_v55 = vperm.slane %v59_v52, %v564_v42 }
  0x85   :  { %v358_v58 = vsel %vm178_vm2, %v357_v51, %v356_v55 }
  0x87   :  { %v79_v46 = vpop.xlane.xlu0 %78  ;;  %v65_v59 = vpop.xlane.xlu2 %64 }
  0x88   :  { %v177_v49 = vperm.slane %v79_v46, %v564_v42  ;;  %v69_v60 = vadd.f32 %v65_v59, %v58_v44  ;;  %v581_v4 = vpop.xlane.xlu1 %118 }
  0x89   :  { %v590_v51 = vmax.f32 %v581_v4, 1.0 }
  0x8a   :  { %v179_v53 = vsel %vm178_vm2, %v177_v49, %v176_v48  ;;  %v362_v63 = vperm.slane %v69_v60, %v575_v57 }
  0x8b   :  { %v181_v54 = vsel %vm171_vm3, %v179_v53, -1e+30  ;;  %v138_v52 = vrot.slane %v590_v51, 1  ;;  %vm146_vm15 = vweird.f32 %v590_v51 }
  0x8c   :  { %v182_v56 = vsel %vm116_vm1, %v181_v54, -inf }
  0x8d   :  { %183 = vmax.xlane.f32.xlu1 %v182_v56  ;;  %vm161_vm11 = vweird.f32 %v138_v52 }
  0x8f   :  { %v68_v61 = vpop.xlane.xlu0 %67  ;;  %v262_v41 = vpop.xlane.xlu2 %261 }
  0x90   :  { %v70_v62 = vadd.f32 %v68_v61, %v58_v44  ;;  %v256_v5 = vpop.xlane.xlu1 %255 }
  0x92   :  { %v363_v2 = vperm.slane %v70_v62, %v575_v57 }
  0x94   :  { %v364_v3 = vsel %vm178_vm2, %v363_v2, %v362_v63 }
  0x95   :  { %v584_v12 = vsel %vm366_vm4, %v358_v58, %v364_v3 }
  0x97   :  { %v86_v53 = vpop.permute.xlu2 %85 }
  0x98   :  { %v259_v8 = vpop.xlane.xlu1 %258  ;;  %v121_v62 = vmul.f32 %v86_v53, %v502_v0  ;;  %vm94_vm10 = vcmp.gt.f32.partialorder %v86_v53, 0.0 }
  0xa0   :  { %v265_v13 = vpop.xlane.xlu1 %264 }
  0xa2   :  { %v279_v7 = vpop.permute.xlu0 %278 }
  0xa3   :  { %v283_v11 = vadd.f32 %v279_v7, %v259_v8  ;;  %v285_v14 = vadd.f32 %v279_v7, %v265_v13  ;;  %v123_v7 = vsel %vm51_vm0, %v121_v62, 0.0  ;;  %v100_v8 = vsel %vm94_vm10, %v502_v0, -1e+30 }
  0xa6   :  { %272 = vperm.xlu1 %394, %v266_v36  }
  0xae   :  { %397 = vset.pattern.permute.xlu1 %v523_v10 }
  0xb2   :  { %v93_v22 = vpop.permute.xlu0 %92 }
  0xb3   :  { %vm95_vm9 = vcmp.gt.f32.partialorder %v93_v22, 0.0 }
  0xb4   :  { %v101_v56 = vsel %vm95_vm9, %v520_v9, -1e+30 }
  0xb5   :  { %v109_v63 = vsel %vm51_vm0, %v101_v56, -inf }
  0xb6   :  { %v110_v4 = vrot.slane %v109_v63, 4 }
  0xba   :  { %v309_v24 = vpop.permute.xlu0 %308 }
 0x100   :  { %v184_v15 = vpop.xlane.xlu1 %183 }
 0x101   :  { %v185_v16 = vsub.f32 %v181_v54, %v184_v15  ;;  %v122_v54 = vmul.f32 %v93_v22, %v520_v9  ;;  %v111_v15 = vmax.f32 %v109_v63, %v110_v4 }
 0x103   :  { %v186_v17 = vmul.f32 1.442695, %v185_v16  ;;  %v130_v55 = vsel %vm51_vm0, %v122_v54, 0.0 }
 0x104   :  { %v131_v61 = vrot.slane %v130_v55, 4 }
 0x105   :  { %402 = vpow2.f32 %v186_v17  ;;  %v102_v17 = vsel %vm51_vm0, %v100_v8, -inf }
 0x10b   :  { %v403_v19 = vpop.eup %402 }
 0x10c   :  { %v188_v20 = vmul.f32 %v403_v19, %v548_v26 }
 0x10e   :  { %v189_v21 = vsel %vm116_vm1, %v188_v20, 0.0 }
 0x10f   :  { %190 = vadd.xlane.f32.xlu1 %v189_v21  ;;  %v103_v21 = vrot.slane %v102_v17, 4 }
 0x118   :  { %v273_v23 = vpop.permute.xlu1 %272 }
 0x119   :  { %v282_v10 = vadd.f32 %v273_v23, %v256_v5  ;;  %v132_v5 = vadd.f32 %v131_v61, %v130_v55 }
 0x11b   :  { %404 = vtanh.f32 %v282_v10  ;;  %v133_v16 = vrot.slane %v132_v5, 2 }
 0x11d   :  { %v134_v10 = vadd.f32 %v133_v16, %v132_v5 }
 0x121   :  { %v405_v25 = vpop.eup %404 }
 0x122   :  { %v318_v27 = vmul.f32 %v405_v25, %v309_v24 }
 0x124   :  { %327 = vperm.xlu0 %399, %v318_v27  }
 0x128   :  { %314 = vperm.xlu1 %397, %v302_v43   ;;  %v284_v43 = vadd.f32 %v273_v23, %v262_v41  ;;  %v112_v23 = vrot.slane %v111_v15, 2  ;;  %v152_v41 = vand.u32 2147483648, %v590_v51 }
 0x12a   :  { %v153_v55 = vor.u32 1.1754944e-38, %v152_v41 }
 0x130   :  { %398 = vset.pattern.permute.xlu1 %v514_v6 }
 0x182   :  { %v191_v28 = vpop.xlane.xlu1 %190 }
 0x183   :  { %v192_v29 = vmax.f32 %v191_v28, 1e-20  ;;  %v165_v28 = vand.u32 2147483647, %v138_v52 }
 0x185   :  { %406 = vrcp.f32 %v192_v29  ;;  %v204_v32 = vand.u32 2147483648, %v192_v29  ;;  %v202_v34 = vand.u32 2147483647, %v192_v29  ;;  %vm198_vm6 = vweird.f32 %v192_v29 }
 0x186   :  { %408 = vtanh.f32 %v283_v11  ;;  %vm166_vm14 = vcmp.eq.f32.partialorder %v165_v28, 8.507059e+37 }
 0x187   :  { %v205_v36 = vor.u32 1.1754944e-38, %v204_v32  ;;  %vm203_vm8 = vcmp.eq.f32.partialorder %v202_v34, 8.507059e+37  ;;  %410 = vtanh.f32 %v285_v14  ;;  %v124_v14 = vrot.slane %v123_v7, 4 }
 0x188   :  { %412 = vtanh.f32 %v284_v43  ;;  %v113_v32 = vmax.f32 %v111_v15, %v112_v23 }
 0x189   :  { %414 = vrcp.f32 %v138_v52  ;;  %v125_v22 = vadd.f32 %v124_v14, %v123_v7  ;;  %v290_v14 = vperm.slane %v507_v1, 3 }
 0x18a   :  { %416 = vrcp.f32 %v590_v51 }
 0x18b   :  { %v407_v30 = vpop.eup %406 }
 0x18c   :  { %v194_v31 = vmul.f32 %v407_v30, %v192_v29  ;;  %vm199_vm5 = vweird.f32 %v407_v30  ;;  %v409_v45 = vpop.eup %408 }
 0x18d   :  { %vm200_vm7 = vmor %vm198_vm6, %vm199_vm5  ;;  %v411_v46 = vpop.eup %410  ;;  %vm341_vm5 = vcmask 130112   ;;  %vm298_vm6 = vcmask 123904  }
 0x18e   :  { %v195_v26 = vsub.f32 1.0, %v194_v31  ;;  %v413_v49 = vpop.eup %412  ;;  %v104_v31 = vmax.f32 %v102_v17, %v103_v21 }
 0x18f   :  { %v320_v50 = vmul.f32 %v413_v49, %v309_v24  ;;  %v415_v59 = vpop.eup %414  ;;  %v167_v24 = vand.u32 2147483648, %v138_v52 }
 0x190   :  { %v196_v33 = vmul.f32 %v407_v30, %v195_v26  ;;  %v157_v2 = vmul.f32 %v415_v59, %v138_v52  ;;  %vm162_vm12 = vweird.f32 %v415_v59  ;;  %v126_v26 = vrot.slane %v125_v22, 2 }
 0x191   :  { %vm605_vm13 = vmor %vm161_vm11, %vm162_vm12  ;;  %v168_v34 = vor.u32 1.1754944e-38, %v167_v24 }
 0x192   :  { %v197_v35 = vadd.f32 %v407_v30, %v196_v33  ;;  %v158_v11 = vsub.f32 1.0, %v157_v2  ;;  %v135_v33 = vrot.slane %v134_v10, 1 }
 0x194   :  { %v201_v37 = vsel %vm200_vm7, %v407_v30, %v197_v35  ;;  %v159_v19 = vmul.f32 %v415_v59, %v158_v11  ;;  %vm369_vm7 = vcmask 138240  }
 0x195   :  { %v206_v38 = vsel %vm203_vm8, %v205_v36, %v201_v37 }
 0x196   :  { %v207_v39 = vmul.f32 %v206_v38, %v188_v20  ;;  %v160_v27 = vadd.f32 %v415_v59, %v159_v19  ;;  %v105_v38 = vrot.slane %v104_v31, 2  ;;  %v328_v16 = vpop.permute.xlu0 %327 }
 0x198   :  { %v215_v40 = vperm.slane %v207_v39, 1  ;;  %v208_v6 = vperm.slane %v207_v39, 0  ;;  %v164_v36 = vsel %vm605_vm13, %v415_v59, %v160_v27  ;;  %v127_v39 = vadd.f32 %v126_v26, %v125_v22 }
 0x199   :  { %v169_v43 = vsel %vm166_vm14, %v168_v34, %v164_v36  ;;  %v338_v22 = vperm.slane %v328_v16, %v564_v42 }
 0x19a   :  { %220 = vperm.xlu2 %393, %v215_v40   ;;  %213 = vperm.xlu1 %398, %v208_v6   ;;  %v315_v44 = vpop.permute.xlu1 %314  ;;  %v114_v40 = vrot.slane %v113_v32, 1  ;;  %v136_v6 = vadd.f32 %v135_v33, %v134_v10  ;;  %v128_v52 = vrot.slane %v127_v39, 1  ;;  %v352_v33 = vstv %s389_s4 }
 0x19b   :  { %v319_v47 = vmul.f32 %v409_v45, %v315_v44  ;;  %v321_v48 = vmul.f32 %v411_v46, %v315_v44  ;;  %v150_v45 = vand.u32 2147483647, %v590_v51 }
 0x19c   :  { %v115_v53 = vmax.f32 %v113_v32, %v114_v40  ;;  %v170_v54 = vmul.f32 %v169_v43, %v136_v6  ;;  %v129_v61 = vadd.f32 %v128_v52, %v127_v39 }
 0x19d   :  { %vm151_vm4 = vcmp.eq.f32.partialorder %v150_v45, 8.507059e+37 }
 0x19e   :  { %v239_v62 = vadd.f32 %v170_v54, %v115_v53 }
 0x1a2   :  { %401 = vset.pattern.permute.xlu2 %v459_v18  ;;  %400 = vset.pattern.permute.xlu1 %v459_v18 }
 0x1a3   :  { %336 = vperm.xlu2 %401, %v321_v48   ;;  %330 = vperm.xlu1 %400, %v319_v47  }
 0x1ab   :  { %333 = vperm.xlu1 %400, %v320_v50   ;;  %v106_v50 = vmax.f32 %v104_v31, %v105_v38 }
 0x1f4   :  { %v221_v58 = vpop.permute.xlu2 %220 }
 0x1f5   :  { %v223_v60 = vmul.f32 %v221_v58, %v520_v9  ;;  %v417_v9 = vpop.eup %416 }
 0x1f6   :  { %v142_v18 = vmul.f32 %v417_v9, %v590_v51  ;;  %vm147_vm1 = vweird.f32 %v417_v9 }
 0x1f7   :  { %v231_v3 = vsel %vm51_vm0, %v223_v60, 0.0  ;;  %vm614_vm3 = vmor %vm146_vm15, %vm147_vm1  ;;  %v107_v60 = vrot.slane %v106_v50, 1 }
 0x1f8   :  { %v232_v13 = vrot.slane %v231_v3, 4  ;;  %v143_v25 = vsub.f32 1.0, %v142_v18 }
 0x1f9   :  { %v108_v5 = vmax.f32 %v106_v50, %v107_v60 }
 0x1fa   :  { %v233_v20 = vadd.f32 %v232_v13, %v231_v3  ;;  %v144_v35 = vmul.f32 %v417_v9, %v143_v25 }
 0x1fc   :  { %v234_v29 = vrot.slane %v233_v20, 2  ;;  %v145_v44 = vadd.f32 %v417_v9, %v144_v35 }
 0x1fd   :  { %v337_v17 = vpop.permute.xlu2 %336 }
 0x1fe   :  { %v235_v37 = vadd.f32 %v234_v29, %v233_v20  ;;  %v149_v58 = vsel %vm614_vm3, %v417_v9, %v145_v44  ;;  %v344_v23 = vperm.slane %v337_v17, %v575_v57 }
 0x1ff   :  { %v154_v2 = vsel %vm151_vm4, %v153_v55, %v149_v58 }
 0x200   :  { %v236_v46 = vrot.slane %v235_v37, 1  ;;  %v155_v7 = vmul.f32 %v154_v2, %v129_v61 }
 0x202   :  { %v237_v51 = vadd.f32 %v236_v46, %v235_v37  ;;  %v238_v9 = vadd.f32 %v155_v7, %v108_v5 }
 0x20c   :  { %v214_v47 = vpop.permute.xlu1 %213 }
 0x20d   :  { %v222_v49 = vmul.f32 %v214_v47, %v502_v0  ;;  %v241_v0 = vadd.f32 %v239_v62, %v237_v51 }
 0x20f   :  { %v224_v56 = vsel %vm51_vm0, %v222_v49, 0.0  ;;  %v243_v13 = vmul.f32 0.33333334, %v241_v0 }
 0x210   :  { %v225_v59 = vrot.slane %v224_v56, 4 }
 0x211   :  { %v292_v20 = vmul.f32 %v290_v14, %v243_v13 }
 0x212   :  { %v226_v63 = vadd.f32 %v225_v59, %v224_v56 }
 0x213   :  { %v295_v28 = vrot.slane %v292_v20, 7 }
 0x214   :  { %v227_v3 = vrot.slane %v226_v63, 2 }
 0x215   :  { %v331_v4 = vpop.permute.xlu1 %330 }
 0x216   :  { %v228_v8 = vadd.f32 %v227_v3, %v226_v63  ;;  %v340_v18 = vperm.slane %v331_v4, %v575_v57 }
 0x218   :  { %v229_v11 = vrot.slane %v228_v8, 1  ;;  %v342_v25 = vsel %vm341_vm5, %v340_v18, %v338_v22 }
 0x21a   :  { %v230_v15 = vadd.f32 %v229_v11, %v228_v8 }
 0x21c   :  { %v240_v19 = vadd.f32 %v238_v9, %v230_v15 }
 0x21d   :  { %v334_v21 = vpop.permute.xlu1 %333 }
 0x21e   :  { %v343_v10 = vperm.slane %v334_v21, %v564_v42  ;;  %v242_v24 = vmul.f32 0.33333334, %v240_v19 }
 0x220   :  { %v345_v1 = vsel %vm341_vm5, %v344_v23, %v343_v10  ;;  %v291_v27 = vmul.f32 %v290_v14, %v242_v24 }
 0x221   :  { %v346_v29 = vsel %vm178_vm2, %v345_v1, %v342_v25 }
 0x222   :  { %v348_v30 = vsel %vm298_vm6, %v346_v29, 0.0  ;;  %v296_v31 = vsel %vm178_vm2, %v295_v28, %v291_v27 }
 0x223   :  { %349 = vadd.xlane.f32.xlu1 %v348_v30  ;;  %v299_v26 = vsel %vm298_vm6, %v296_v31, 0.0 }
 0x224   :  { %300 = vadd.xlane.f32.xlu0 %v299_v26 }
 0x296   :  { %v350_v32 = vpop.xlane.xlu1 %349 }
 0x297   :  { %v301_v57 = vpop.xlane.xlu0 %300 }
 0x298   :  { %v351_v34 = vadd.f32 %v350_v32, %v301_v57 }
 0x29a   :  { %v353_v42 = vadd.f32 %v352_v33, %v351_v34 }
 0x29c   :  { %v368_v35 = vsel %vm51_vm0, %v584_v12, %v353_v42 }
 0x29d   :  { %v370_v36 = vsel %vm369_vm7, %v368_v35, 0.0 }
 0x29e   :  { %371 = vst [vmem:[#allocation5] sm:$0x3] %v370_v36 }
 0x29f   :  { %382 = dma.vmem_to_hbm [thread:$0]  %s378_s16, 32, %s380_s19, [#allocation3]  }
 0x2a0   :  { %456 = dma.done.wait [#allocation3], 32  }
 0x2a1   :  { %457 = vsyncadd [#allocation3], 4294967264 }
 0x2a2   :  { %387 = vsyncpa [#allocation3], 1 }
 0x2a3   :  { %388 = vsyncpa [#allocation4], 1 }

</bundles_post_ra>
